<compile_context>
chip_gen: v5e
topology: v5e:2x2
jax: 0.10.0
libtpu: 0.0.40
codegen_flags: <defaults>
</compile_context>

<pallas_src>
import jax
import jax.numpy as jnp
from jax.experimental import pallas as pl
from jax.experimental.pallas import tpu as pltpu


def _encoder_kernel(x_ref, w_ref, b_ref, o_ref):
    # One fused matmul per N-tile: (B_pad, in_dim) @ (in_dim, tn) -> f32 accum.
    acc = jnp.dot(x_ref[...], w_ref[...], preferred_element_type=jnp.float32)
    # Bias add in f32 on the VPU (free under MXU slack), cast once on store.
    o_ref[...] = (acc + b_ref[...]).astype(o_ref.dtype)


def _round_up(x, m):
    return ((x + m - 1) // m) * m


def encoder_forward(x, w_mu, b_mu, w_var, b_var, *, compute_dtype=jnp.bfloat16):
    """CADA_VAE EncoderTemplate forward: returns (mu, var).

    x:      (B, in_dim)
    w_mu:   (in_dim, out_dim)   (transposed torch weight)
    b_mu:   (1, out_dim) or (out_dim,)
    w_var:  (in_dim, out_dim)
    b_var:  (1, out_dim) or (out_dim,)
    """
    B, in_dim = x.shape
    out_dim = w_mu.shape[1]
    out_dtype = x.dtype

    # --- Fuse the two heads into a single lane-dense matmul -------------------
    w = jnp.concatenate([w_mu, w_var], axis=1)                       # (in_dim, 2*out_dim)
    b = jnp.concatenate([b_mu.reshape(1, -1), b_var.reshape(1, -1)], axis=1)
    N = 2 * out_dim

    # --- TPU-friendly padding / tiling ----------------------------------------
    # N tile: multiple of 128 lanes, capped at 512 to keep double-buffered weight
    # tiles well inside the scoped VMEM limit on all generations (incl. v7x 64 MiB).
    tn = min(512, _round_up(N, 128))
    n_pad = _round_up(N, tn)
    b_pad = _round_up(max(B, 8), 8)

    x_p = jnp.zeros((b_pad, in_dim), compute_dtype).at[:B, :].set(x.astype(compute_dtype))
    w_p = jnp.zeros((in_dim, n_pad), compute_dtype).at[:, :N].set(w.astype(compute_dtype))
    b_p = jnp.zeros((1, n_pad), jnp.float32).at[:, :N].set(b.astype(jnp.float32))

    grid = (n_pad // tn,)

    y = pl.pallas_call(
        _encoder_kernel,
        out_shape=jax.ShapeDtypeStruct((b_pad, n_pad), out_dtype),
        grid=grid,
        in_specs=[
            # x: resident across the N grid (same block every step -> no re-DMA).
            pl.BlockSpec((b_pad, in_dim), lambda j: (0, 0)),
            # Weight tiles stream through, double-buffered by BlockSpec pipelining.
            pl.BlockSpec((in_dim, tn), lambda j: (0, j)),
            pl.BlockSpec((1, tn), lambda j: (0, j)),
        ],
        out_specs=pl.BlockSpec((b_pad, tn), lambda j: (0, j)),
        compiler_params=pltpu.CompilerParams(
            dimension_semantics=("parallel",),          # shards across v7x's 2 TCs
            vmem_limit_bytes=64 * 1024 * 1024,
        ),
    )(x_p, w_p, b_p)

    # Slice back to the original (unpadded) shapes; split fused output into heads.
    mu = y[:B, :out_dim]
    var = y[:B, out_dim:N]
    return mu, var


def init_params(key, in_dim, out_dim, dtype=jnp.float32):
    """Deterministic init mimicking nn.Linear's uniform(-1/sqrt(in), 1/sqrt(in))."""
    k1, k2, k3, k4 = jax.random.split(key, 4)
    bound = 1.0 / (in_dim ** 0.5)
    w_mu = jax.random.uniform(k1, (in_dim, out_dim), dtype, -bound, bound)
    b_mu = jax.random.uniform(k2, (1, out_dim), dtype, -bound, bound)
    w_var = jax.random.uniform(k3, (in_dim, out_dim), dtype, -bound, bound)
    b_var = jax.random.uniform(k4, (1, out_dim), dtype, -bound, bound)
    return w_mu, b_mu, w_var, b_var


if __name__ == "__main__":
    key = jax.random.PRNGKey(0)
    kx, kp = jax.random.split(key)

    B, in_dim, out_dim = 4, 32, 16
    x = jax.random.normal(kx, (B, in_dim), jnp.float32)
    w_mu, b_mu, w_var, b_var = init_params(kp, in_dim, out_dim)

    mu, var = encoder_forward(x, w_mu, b_mu, w_var, b_var)
    jax.block_until_ready((mu, var))

    # sanity check against plain-JAX f32 reference (bf16 compute -> relaxed tol)
    mu_ref = x @ w_mu + b_mu
    var_ref = x @ w_var + b_var
    assert mu.shape == (B, out_dim) and var.shape == (B, out_dim)
    assert jnp.allclose(mu, mu_ref, rtol=2e-2, atol=2e-2), "mu mismatch"
    assert jnp.allclose(var, var_ref, rtol=2e-2, atol=2e-2), "var mismatch"

    print("KERNEL_OK")
</pallas_src>

<mosaic_0001>
module attributes {stable_mosaic.version = 11 : i64} {
  func.func @_encoder_kernel(%arg0: i32, %arg1: memref<8x32xbf16, #tpu.memory_space<vmem>>, %arg2: memref<32x128xbf16, #tpu.memory_space<vmem>>, %arg3: memref<1x128xf32, #tpu.memory_space<vmem>>, %arg4: memref<8x128xf32, #tpu.memory_space<vmem>>) attributes {dimension_semantics = [#tpu.dimension_semantics<parallel>], iteration_bounds = array<i64: 1>, scalar_prefetch = 0 : i64, scratch_operands = 0 : i64, tpu.core_type = #tpu.core_type<tc>, window_params = [{pipeline_mode = #tpu.pipeline_mode<synchronous>, transform_indices = @transform_0, window_bounds = array<i64: 8, 32>}, {transform_indices = @transform_1, window_bounds = array<i64: 32, 128>}, {transform_indices = @transform_2, window_bounds = array<i64: 1, 128>}, {transform_indices = @transform_3, window_bounds = array<i64: 8, 128>}]} {
    %c0 = arith.constant 0 : index
    %c0_0 = arith.constant 0 : index
    %0 = vector.load %arg1[%c0, %c0_0] : memref<8x32xbf16, #tpu.memory_space<vmem>>, vector<8x32xbf16>
    %c0_1 = arith.constant 0 : index
    %c0_2 = arith.constant 0 : index
    %1 = vector.load %arg2[%c0_1, %c0_2] : memref<32x128xbf16, #tpu.memory_space<vmem>>, vector<32x128xbf16>
    %cst = arith.constant dense<0.000000e+00> : vector<8x128xf32>
    %2 = tpu.matmul %0, %1, %cst {dimension_numbers = #tpu.dot_dimension_numbers<[1], [0], [0], [1], [0, 0, 1, 1], [], []>} : vector<8x32xbf16>, vector<32x128xbf16>, vector<8x128xf32> -> vector<8x128xf32>
    %c0_3 = arith.constant 0 : index
    %c0_4 = arith.constant 0 : index
    %3 = vector.load %arg3[%c0_3, %c0_4] : memref<1x128xf32, #tpu.memory_space<vmem>>, vector<1x128xf32>
    %4 = vector.broadcast %3 : vector<1x128xf32> to vector<8x128xf32>
    %5 = arith.addf %2, %4 : vector<8x128xf32>
    %c0_5 = arith.constant 0 : index
    %c0_6 = arith.constant 0 : index
    %6 = vector.load %arg4[%c0_5, %c0_6] : memref<8x128xf32, #tpu.memory_space<vmem>>, vector<8x128xf32>
    tpu.vector_store %arg4[%c0_5, %c0_6], %5 {strides = array<i32>} : memref<8x128xf32, #tpu.memory_space<vmem>>, vector<8x128xf32>,
    return
  }
  func.func @transform_0(%arg0: i32) -> (i32, i32) {
    %c0_i32 = arith.constant 0 : i32
    %c0_i32_0 = arith.constant 0 : i32
    %c0_i32_1 = arith.constant 0 : i32
    return %c0_i32, %c0_i32_0 : i32, i32
  }
  func.func @transform_1(%arg0: i32) -> (i32, i32) {
    %c0_i32 = arith.constant 0 : i32
    %c0_i32_0 = arith.constant 0 : i32
    return %c0_i32, %arg0 : i32, i32
  }
  func.func @transform_2(%arg0: i32) -> (i32, i32) {
    %c0_i32 = arith.constant 0 : i32
    %c0_i32_0 = arith.constant 0 : i32
    return %c0_i32, %arg0 : i32, i32
  }
  func.func @transform_3(%arg0: i32) -> (i32, i32) {
    %c0_i32 = arith.constant 0 : i32
    %c0_i32_0 = arith.constant 0 : i32
    return %c0_i32, %arg0 : i32, i32
  }
}

</mosaic_0001>

<bundles_post_ra>
// kernel: tpu_custom_call.1
= control target key start
LH: loop header
LB: loop body
LE: loop exit
PB: predicated region body
PF: predicated region fallthrough
CT: control target
= control target key end

     0   :  { %8 = vsyncpa [#allocation3], 0  ;;  %s235_s0 = inlined_call_operand.hbm [shape: bf16[8,32], index: 0, kind: input, shape index: {}]   ;;  %s236_s1 = inlined_call_operand.hbm [shape: bf16[32,128], index: 1, kind: input, shape index: {}]   ;;  %s237_s2 = inlined_call_operand.vmem [shape: f32[1,128], index: 2, kind: input, shape index: {}]   ;;  %s238_s3 = inlined_call_operand.hbm [shape: f32[8,128], index: 3, kind: output, shape index: {}]  }
   0x1   :  { %9 = vsyncpa [#allocation6], 0 }
   0x2   :  { %10 = vsyncpa [#allocation4], 0  ;;  %s16_s14 = sshll.u32 %s235_s0, 4  ;;  %s198_s15 = smov [#allocation2]   ;;  %s17_s14 = int_to_ptr.hbm [resolvable:$true] %s16_s14 }
   0x3   :  { %s18_s16 = sshll.u32 %s198_s15, 4  ;;  %s26_s19 = sshll.u32 %s236_s1, 4  ;;  %s19_s16 = int_to_ptr.vmem [resolvable:$true] %s18_s16  ;;  %s27_s19 = int_to_ptr.hbm [resolvable:$true] %s26_s19 }
   0x4   :  { %21 = dma.hbm_to_vmem [thread:$0]  %s17_s14, 64, %s19_s16, [#allocation3]  }
   0x5   :  { %s199_s20 = smov [#allocation5]   ;;  %s200_s22 = smov 64  }
   0x6   :  { %s28_s21 = sshll.u32 %s199_s20, 4  ;;  %s201_s23 = smov 4   ;;  %s29_s21 = int_to_ptr.vmem [resolvable:$true] %s28_s21 }
   0x7   :  { %34 = dma.hbm_to_vmem [thread:$0]  %s27_s19, 256, %s29_s21, [#allocation6], %s200_s22, %s200_s22, %s201_s23  }
   0x8   :  { %192 = dma.done.wait [#allocation3], 64  }
   0x9   :  { %193 = vsyncadd [#allocation3], 4294967232 }
   0xa   :  { %194 = dma.done.wait [#allocation6], 256  }
   0xb   :  { %195 = vsyncadd [#allocation6], 4294967040  ;;  %v113_v0 = vld [vmem:[#allocation5 + $0x8] sm:$0xff]  ;;  %v112_v1 = vld [vmem:[#allocation5] sm:$0xff]  ;;  %vm67_vm0 = vcmask 261120   ;;  %s202_s24 = smov [#allocation7]  }
   0xc   :  { %77 = vmatpush.bf16.msra.mxu0 %v113_v0  ;;  %v46_v2 = vld [vmem:[#allocation2] sm:$0xf]  ;;  %s90_s25 = sshll.u32 %s202_s24, 4  ;;  %s92_s28 = sshll.u32 %s238_s3, 4  ;;  %s91_s25 = int_to_ptr.vmem [resolvable:$true] %s90_s25  ;;  %s93_s28 = int_to_ptr.hbm [resolvable:$true] %s92_s28 }
   0xd   :  { %v119_v3 = vld [vmem:[%s237_s2] ss:$0 sm:$0xff] }
  0x10   :  { %78 = vmatpush.bf16.msra.mxu0 %v112_v1 }
  0x13   :  { %111 = vmatmul.msk.bf16.vlgmr.msra.gmra.mxu0 %vm67_vm0, %v46_v2 }
  0x90   :  { %v80_v4 = vpop.f32.mrf.mxu0 }
  0x91   :  { %v81_v5 = vadd.f32 %v119_v3, %v80_v4 }
  0x93   :  { %84 = vst [vmem:[#allocation7] sm:$0xff] %v81_v5 }
  0x94   :  { %95 = dma.vmem_to_hbm [thread:$0]  %s91_s25, 128, %s93_s28, [#allocation4]  }
  0x98   :  { %v82_v6 = vpop.f32.mrf.mxu0 }
  0x99   :  { %196 = dma.done.wait [#allocation4], 128  }
  0x9a   :  { %197 = vsyncadd [#allocation4], 4294967168 }
  0x9b   :  { %100 = vsyncpa [#allocation3], 1 }
  0x9c   :  { %101 = vsyncpa [#allocation6], 1 }
  0x9d   :  { %102 = vsyncpa [#allocation4], 1 }

</bundles_post_ra>
